<compile_context>
chip_gen: v7x
topology: tpu7x:2x2x1
jax: 0.10.0
libtpu: 0.0.40
codegen_flags: <defaults>
</compile_context>

<pallas_src>
import functools

import jax
import jax.numpy as jnp
from jax.experimental import pallas as pl
from jax.experimental.pallas import tpu as pltpu


_LANE = 128      # vreg lane width  (last dim)
_SUBLANE = 8     # vreg sublane height (second-to-last dim)


def _round_up(x, m):
    return ((x + m - 1) // m) * m


def _pad2(a, rows, cols):
    r, c = a.shape
    return jnp.pad(a, ((0, rows - r), (0, cols - c)))


def _pack_rows(rows, width):
    """Pack small (1, d) vectors into one (8, width) f32 operand (zero pad)."""
    out = jnp.zeros((_SUBLANE, width), jnp.float32)
    for r, v in enumerate(rows):
        v = jnp.asarray(v, jnp.float32).reshape(-1)
        out = out.at[r, : v.shape[0]].set(v)
    return out


# --------------------------------- kernel ------------------------------------

def _fused_mlp_kernel(x_ref, vec0_ref, *rest,
                      layer_meta, use_ln_inp, din_true, eps):
    """Fused: [LN0] -> ( x@W + b -> [LN] -> act ) * N_layers, in one call.

    rest = (W0, V0, W1, V1, ..., out_ref)
      Wi : (din_pad, dout_pad) bfloat16
      Vi : (8, dout_pad) f32 packed rows: 0=bias, 1=gamma, 2=beta
      vec0_ref : (8, din_pad) packed rows: 0=ln0 gamma, 1=ln0 beta
    layer_meta = ((dout_true, use_ln, act), ...)  (static, trace-time unrolled)
    """
    o_ref = rest[-1]
    lrefs = rest[:-1]

    # Hoisted lane-index iota / masks: built once per distinct shape / width
    # and reused across the unrolled layers (JAX does not CSE broadcast_in_dim).
    iota_cache = {}
    mask_cache = {}

    def get_mask(shape, n_true):
        if n_true == shape[-1]:
            return None
        key = (shape, n_true)
        m = mask_cache.get(key)
        if m is None:
            it = iota_cache.get(shape)
            if it is None:
                it = jax.lax.broadcasted_iota(jnp.int32, shape, len(shape) - 1)
                iota_cache[shape] = it
            m = it < n_true
            mask_cache[key] = m
        return m

    def layernorm(y, gamma, beta, n_true):
        # Torch-style LayerNorm: gamma*(x-mean)/(std+eps)+beta, unbiased std.
        # Padded lanes of y are exact zeros on entry (zero-padded x / zero
        # padded W columns, bias), so the unmasked sum already equals the sum
        # over the true lanes -> no mask needed for the mean.
        mean = jnp.sum(y, axis=-1, keepdims=True) * (1.0 / n_true)
        diff = y - mean
        m = get_mask(y.shape, n_true)
        if m is not None:
            diff = jnp.where(m, diff, 0.0)
        var = jnp.sum(diff * diff, axis=-1, keepdims=True) * (1.0 / (n_true - 1))
        # approx=True -> EUP reciprocal (otherwise-idle slot) instead of a VPU
        # divide on the critical path.
        inv = pl.reciprocal(jnp.sqrt(var) + eps, approx=True)
        return gamma * diff * inv + beta

    def apply_act(y, act, n_true):
        if act in ("linear", "none"):
            return y                      # LeakyReLU(1) / no_activation
        if act == "relu":
            return jnp.maximum(y, 0.0)
        if act == "tanh":
            return jnp.tanh(y)
        if act == "sigmoid":
            return jax.nn.sigmoid(y)
        if act == "leaky_relu":
            return jnp.where(y >= 0, y, 0.2 * y)
        if act == "elu":
            return jnp.where(y >= 0, y, jnp.expm1(y))
        if act == "softmax":              # nn.LogSoftmax(dim=1)
            m = get_mask(y.shape, n_true)
            if m is None:
                return jax.nn.log_softmax(y, axis=-1)
            z = jnp.where(m, y, -jnp.inf)
            out = jax.nn.log_softmax(z, axis=-1)
            return jnp.where(m, out, 0.0)   # keep padded lanes finite
        raise ValueError(f"unknown activation: {act}")

    y = x_ref[...].astype(jnp.float32)
    if use_ln_inp:
        v0 = vec0_ref[...]
        y = layernorm(y, v0[0:1, :], v0[1:2, :], din_true)

    for li, (dout_true, use_ln, act) in enumerate(layer_meta):
        w = lrefs[2 * li][...]            # bf16 (din_pad, dout_pad)
        v = lrefs[2 * li + 1][...]        # f32  (8, dout_pad)
        b, g, be = v[0:1, :], v[1:2, :], v[2:3, :]
        # bf16 MXU inputs, f32 accumulation.  Padded K/N are exact zeros.
        y = jnp.dot(y.astype(jnp.bfloat16), w,
                    preferred_element_type=jnp.float32) + b
        if use_ln:
            y = layernorm(y, g, be, dout_true)
        if act != "linear":               # torch forward skips act for 'linear'
            y = apply_act(y, act, dout_true)
        # dropout: eval-mode identity

    o_ref[...] = y.astype(o_ref.dtype)


# ------------------------------ MLP module ------------------------------------

class PallasMLP:
    def __init__(self, options, key):
        self.input_dim = int(options["input_dim"])
        self.fc_lay = list(options["fc_lay"])
        self.fc_drop = list(options["fc_drop"])              # eval: identity
        self.fc_use_batchnorm = list(options["fc_use_batchnorm"])
        self.fc_use_laynorm = list(options["fc_use_laynorm"])
        self.fc_use_laynorm_inp = bool(options["fc_use_laynorm_inp"])
        self.fc_use_batchnorm_inp = bool(options["fc_use_batchnorm_inp"])
        self.fc_act = list(options["fc_act"])
        self.N_fc_lay = len(self.fc_lay)
        self.eps = 1e-6

        # TODO(synk): BatchNorm1d (running-stats) branches not implemented.
        assert not self.fc_use_batchnorm_inp, "BatchNorm input path unused"
        assert not any(self.fc_use_batchnorm), "BatchNorm path unused here"

        # ---- true (un-padded) parameters, same init as the PyTorch __init__ --
        self.ln0_gamma = jnp.ones((1, self.input_dim), jnp.float32)
        self.ln0_beta = jnp.zeros((1, self.input_dim), jnp.float32)
        self.W, self.b, self.ln_gamma, self.ln_beta = [], [], [], []
        cur = self.input_dim
        for i in range(self.N_fc_lay):
            out = self.fc_lay[i]
            key, sub = jax.random.split(key)
            lim = (0.01 / (cur + out)) ** 0.5
            # stored as [in, out] (transpose of the torch [out, in] weight)
            self.W.append(jax.random.uniform(sub, (cur, out), jnp.float32,
                                             -lim, lim))
            self.b.append(jnp.zeros((1, out), jnp.float32))
            self.ln_gamma.append(jnp.ones((1, out), jnp.float32))
            self.ln_beta.append(jnp.zeros((1, out), jnp.float32))
            cur = out

        # ---- lane-padded kernel parameters (feature dims -> mult. of 128) ----
        # All padding is zeros: padded K rows / N cols of W, bias, gamma, beta
        # contribute nothing, so padded lanes stay exactly zero through
        # matmul+bias and LayerNorm.
        self.dims_pad = ([_round_up(self.input_dim, _LANE)]
                         + [_round_up(d, _LANE) for d in self.fc_lay])
        dp0 = self.dims_pad[0]
        # ln0 gamma/beta packed into one (8, dp0) operand: row0=gamma, row1=beta.
        self.vec0_p = _pack_rows([self.ln0_gamma, self.ln0_beta], dp0)
        self.W_bf16, self.vec_p = [], []
        for i in range(self.N_fc_lay):
            di, do = self.dims_pad[i], self.dims_pad[i + 1]
            # bf16 MXU inputs (f32 accumulation in-kernel): fewer vmatmul
            # passes on v5e/v6e/v7x and half the weight footprint.
            self.W_bf16.append(_pad2(self.W[i], di, do).astype(jnp.bfloat16))
            # bias / gamma / beta packed into one (8, do) operand per layer.
            self.vec_p.append(_pack_rows(
                [self.b[i], self.ln_gamma[i], self.ln_beta[i]], do))

        self._core_parallel_ok = None     # lazily determined

    def __call__(self, x, *, batch_tile=1024):
        B, D = x.shape
        assert D == self.input_dim
        # Pick the tile count first, then the tile: never adds a wasted tile.
        n_tiles = max(1, -(-B // batch_tile))
        TB = _round_up(-(-B // n_tiles), _SUBLANE)
        B_pad = n_tiles * TB
        din_p, dout_p = self.dims_pad[0], self.dims_pad[-1]
        # Lane-padding x/out to 128 keeps loads/stores unmasked and lane-dense.
        # (Only revisit if profiling at very large B shows HBM-bound.)
        x_p = jnp.pad(x.astype(jnp.float32),
                      ((0, B_pad - B), (0, din_p - D)))

        layer_meta = tuple(
            (self.fc_lay[i], bool(self.fc_use_laynorm[i]), self.fc_act[i])
            for i in range(self.N_fc_lay))
        kernel = functools.partial(
            _fused_mlp_kernel,
            layer_meta=layer_meta,
            use_ln_inp=self.fc_use_laynorm_inp,
            din_true=self.input_dim,
            eps=self.eps)

        # x / out are row-tiled over the batch; weights & packed vectors use
        # constant index maps so they stay resident across grid steps.
        in_specs = [
            pl.BlockSpec((TB, din_p), lambda g: (g, 0)),
            pl.BlockSpec((_SUBLANE, din_p), lambda g: (0, 0)),
        ]
        args = [x_p, self.vec0_p]
        for i in range(self.N_fc_lay):
            di, do = self.dims_pad[i], self.dims_pad[i + 1]
            in_specs += [
                pl.BlockSpec((di, do), lambda g: (0, 0)),
                pl.BlockSpec((_SUBLANE, do), lambda g: (0, 0)),
            ]
            args += [self.W_bf16[i], self.vec_p[i]]

        def run(dim_sem):
            return pl.pallas_call(
                kernel,
                out_shape=jax.ShapeDtypeStruct((B_pad, dout_p), jnp.float32),
                grid=(n_tiles,),
                in_specs=in_specs,
                out_specs=pl.BlockSpec((TB, dout_p), lambda g: (g, 0)),
                compiler_params=pltpu.CompilerParams(
                    dimension_semantics=(dim_sem,),
                    # per-tile VMEM is ~2 MiB even at TB=1024; explicit cap is
                    # safe on every generation (v7x 64 MiB, v5e/v6e 128 MiB).
                    vmem_limit_bytes=32 * 1024 * 1024),
            )(*args)

        if n_tiles == 1:
            out = run("arbitrary")
        elif self._core_parallel_ok is None:
            # CORE_PARALLEL is what actually shards batch tiles across v7x's
            # two TensorCores ("parallel" is a codegen no-op); fall back on
            # chips / runtimes that reject it.
            try:
                out = jax.block_until_ready(run(pltpu.CORE_PARALLEL))
                self._core_parallel_ok = True
            except Exception:
                self._core_parallel_ok = False
                out = run("parallel")
        elif self._core_parallel_ok:
            out = run(pltpu.CORE_PARALLEL)
        else:
            out = run("parallel")

        return out[:B, :self.fc_lay[-1]]


# --------------------------- pure-JAX reference -------------------------------

def _apply_act_ref(y, act):
    if act in ("linear", "none"):
        return y
    if act == "relu":
        return jnp.maximum(y, 0.0)
    if act == "tanh":
        return jnp.tanh(y)
    if act == "sigmoid":
        return jax.nn.sigmoid(y)
    if act == "leaky_relu":
        return jnp.where(y >= 0, y, 0.2 * y)
    if act == "elu":
        return jnp.where(y >= 0, y, jnp.expm1(y))
    if act == "softmax":
        return jax.nn.log_softmax(y, axis=-1)
    raise ValueError(act)


def reference_mlp(mlp, x, *, bf16_matmul=False):
    """Pure-JAX reference of the torch forward (eval mode).

    bf16_matmul=True rounds the dot operands to bfloat16 with f32 accumulation
    to match the kernel's MXU numerics (the torch math itself is unchanged).
    """
    def ln(y, g, b):
        n = y.shape[-1]
        mean = jnp.mean(y, -1, keepdims=True)
        var = jnp.sum((y - mean) ** 2, -1, keepdims=True) / (n - 1)
        return g * (y - mean) / (jnp.sqrt(var) + mlp.eps) + b

    y = x.astype(jnp.float32)
    if mlp.fc_use_laynorm_inp:
        y = ln(y, mlp.ln0_gamma, mlp.ln0_beta)
    for i in range(mlp.N_fc_lay):
        if bf16_matmul:
            z = jnp.dot(y.astype(jnp.bfloat16), mlp.W[i].astype(jnp.bfloat16),
                        preferred_element_type=jnp.float32) + mlp.b[i]
        else:
            z = jnp.dot(y, mlp.W[i]) + mlp.b[i]
        if mlp.fc_use_laynorm[i]:
            z = ln(z, mlp.ln_gamma[i], mlp.ln_beta[i])
        if mlp.fc_act[i] != "linear":
            z = _apply_act_ref(z, mlp.fc_act[i])
        y = z
    return y


# ---------------------------------- main ---------------------------------------

if __name__ == "__main__":
    options = {
        "input_dim": 32,
        "fc_lay": [64, 64, 32],
        "fc_drop": [0.0, 0.0, 0.0],
        "fc_use_batchnorm": [False, False, False],
        "fc_use_laynorm": [True, False, True],
        "fc_use_laynorm_inp": True,
        "fc_use_batchnorm_inp": False,
        "fc_act": ["relu", "tanh", "linear"],
    }

    key = jax.random.PRNGKey(0)
    key, xkey, pkey = jax.random.split(key, 3)

    B = 10   # not a multiple of 8: exercises batch (row) padding too
    x = jax.random.normal(xkey, (B, options["input_dim"]), jnp.float32)

    mlp = PallasMLP(options, pkey)

    out = mlp(x)
    out = jax.block_until_ready(out)
    assert out.shape == (B, options["fc_lay"][-1])

    # Reference with matched matmul numerics (bf16 MXU inputs, f32 accum).
    ref = reference_mlp(mlp, x, bf16_matmul=True)
    # Tolerance absorbs the EUP approximate reciprocal in LayerNorm and the
    # slightly different bf16 rounding / accumulation order vs the reference;
    # outputs are O(1) after the final LayerNorm.
    assert jnp.allclose(out, ref, rtol=2e-2, atol=2e-2), "mismatch vs reference"

    print("KERNEL_OK")
</pallas_src>

<mosaic_0001>
module attributes {stable_mosaic.version = 11 : i64} {
  func.func @_fused_mlp_kernel(%arg0: i32, %arg1: memref<16x128xf32, #tpu.memory_space<vmem>>, %arg2: memref<8x128xf32, #tpu.memory_space<vmem>>, %arg3: memref<128x128xbf16, #tpu.memory_space<vmem>>, %arg4: memref<8x128xf32, #tpu.memory_space<vmem>>, %arg5: memref<128x128xbf16, #tpu.memory_space<vmem>>, %arg6: memref<8x128xf32, #tpu.memory_space<vmem>>, %arg7: memref<128x128xbf16, #tpu.memory_space<vmem>>, %arg8: memref<8x128xf32, #tpu.memory_space<vmem>>, %arg9: memref<16x128xf32, #tpu.memory_space<vmem>>) attributes {dimension_semantics = [#tpu.dimension_semantics<arbitrary>], iteration_bounds = array<i64: 1>, scalar_prefetch = 0 : i64, scratch_operands = 0 : i64, tpu.core_type = #tpu.core_type<tc>, window_params = [{transform_indices = @transform_0, window_bounds = array<i64: 16, 128>}, {pipeline_mode = #tpu.pipeline_mode<synchronous>, transform_indices = @transform_1, window_bounds = array<i64: 8, 128>}, {pipeline_mode = #tpu.pipeline_mode<synchronous>, transform_indices = @transform_2, window_bounds = array<i64: 128, 128>}, {pipeline_mode = #tpu.pipeline_mode<synchronous>, transform_indices = @transform_3, window_bounds = array<i64: 8, 128>}, {pipeline_mode = #tpu.pipeline_mode<synchronous>, transform_indices = @transform_4, window_bounds = array<i64: 128, 128>}, {pipeline_mode = #tpu.pipeline_mode<synchronous>, transform_indices = @transform_5, window_bounds = array<i64: 8, 128>}, {pipeline_mode = #tpu.pipeline_mode<synchronous>, transform_indices = @transform_6, window_bounds = array<i64: 128, 128>}, {pipeline_mode = #tpu.pipeline_mode<synchronous>, transform_indices = @transform_7, window_bounds = array<i64: 8, 128>}, {transform_indices = @transform_8, window_bounds = array<i64: 16, 128>}]} {
    %c0 = arith.constant 0 : index
    %c0_0 = arith.constant 0 : index
    %0 = vector.load %arg1[%c0, %c0_0] : memref<16x128xf32, #tpu.memory_space<vmem>>, vector<16x128xf32>
    %c0_1 = arith.constant 0 : index
    %c0_2 = arith.constant 0 : index
    %1 = vector.load %arg2[%c0_1, %c0_2] : memref<8x128xf32, #tpu.memory_space<vmem>>, vector<8x128xf32>
    %2 = vector.extract_strided_slice %1 {offsets = [0, 0], sizes = [1, 128], strides = [1, 1]} : vector<8x128xf32> to vector<1x128xf32>
    %3 = vector.extract_strided_slice %1 {offsets = [1, 0], sizes = [1, 128], strides = [1, 1]} : vector<8x128xf32> to vector<1x128xf32>
    %cst = arith.constant dense<0.000000e+00> : vector<16xf32>
    %4 = vector.multi_reduction <add>, %0, %cst [1] : vector<16x128xf32> to vector<16xf32>
    %5 = vector.shape_cast %4 : vector<16xf32> to vector<16x1xf32>
    %cst_3 = arith.constant 3.125000e-02 : f32
    %6 = vector.broadcast %cst_3 : f32 to vector<16x1xf32>
    %7 = arith.mulf %5, %6 : vector<16x1xf32>
    %8 = vector.broadcast %7 : vector<16x1xf32> to vector<16x128xf32>
    %9 = arith.subf %0, %8 : vector<16x128xf32>
    %10 = tpu.iota {dimensions = array<i32: 1>} : vector<16x128xi32>
    %c32_i32 = arith.constant 32 : i32
    %11 = vector.broadcast %c32_i32 : i32 to vector<16x128xi32>
    %12 = arith.cmpi slt, %10, %11 : vector<16x128xi32>
    %cst_4 = arith.constant 0.000000e+00 : f32
    %13 = vector.broadcast %cst_4 : f32 to vector<16x128xf32>
    %14 = arith.select %12, %9, %13 : vector<16x128xi1>, vector<16x128xf32>
    %15 = arith.mulf %14, %14 : vector<16x128xf32>
    %cst_5 = arith.constant dense<0.000000e+00> : vector<16xf32>
    %16 = vector.multi_reduction <add>, %15, %cst_5 [1] : vector<16x128xf32> to vector<16xf32>
    %17 = vector.shape_cast %16 : vector<16xf32> to vector<16x1xf32>
    %cst_6 = arith.constant 0.0322580636 : f32
    %18 = vector.broadcast %cst_6 : f32 to vector<16x1xf32>
    %19 = arith.mulf %17, %18 : vector<16x1xf32>
    %20 = math.sqrt %19 : vector<16x1xf32>
    %cst_7 = arith.constant 9.99999997E-7 : f32
    %21 = vector.broadcast %cst_7 : f32 to vector<16x1xf32>
    %22 = arith.addf %20, %21 : vector<16x1xf32>
    %23 = tpu.reciprocal %22 {approx = true} : vector<16x1xf32> -> vector<16x1xf32>
    %24 = vector.broadcast %2 : vector<1x128xf32> to vector<16x128xf32>
    %25 = arith.mulf %24, %14 : vector<16x128xf32>
    %26 = vector.broadcast %23 : vector<16x1xf32> to vector<16x128xf32>
    %27 = arith.mulf %25, %26 : vector<16x128xf32>
    %28 = vector.broadcast %3 : vector<1x128xf32> to vector<16x128xf32>
    %29 = arith.addf %27, %28 : vector<16x128xf32>
    %c0_8 = arith.constant 0 : index
    %c0_9 = arith.constant 0 : index
    %30 = vector.load %arg3[%c0_8, %c0_9] : memref<128x128xbf16, #tpu.memory_space<vmem>>, vector<128x128xbf16>
    %c0_10 = arith.constant 0 : index
    %c0_11 = arith.constant 0 : index
    %31 = vector.load %arg4[%c0_10, %c0_11] : memref<8x128xf32, #tpu.memory_space<vmem>>, vector<8x128xf32>
    %32 = vector.extract_strided_slice %31 {offsets = [0, 0], sizes = [1, 128], strides = [1, 1]} : vector<8x128xf32> to vector<1x128xf32>
    %33 = vector.extract_strided_slice %31 {offsets = [1, 0], sizes = [1, 128], strides = [1, 1]} : vector<8x128xf32> to vector<1x128xf32>
    %34 = vector.extract_strided_slice %31 {offsets = [2, 0], sizes = [1, 128], strides = [1, 1]} : vector<8x128xf32> to vector<1x128xf32>
    %35 = arith.truncf %29 : vector<16x128xf32> to vector<16x128xbf16>
    %cst_12 = arith.constant dense<0.000000e+00> : vector<16x128xf32>
    %36 = tpu.matmul %35, %30, %cst_12 {dimension_numbers = #tpu.dot_dimension_numbers<[1], [0], [0], [1], [0, 0, 1, 1], [], []>} : vector<16x128xbf16>, vector<128x128xbf16>, vector<16x128xf32> -> vector<16x128xf32>
    %37 = vector.broadcast %32 : vector<1x128xf32> to vector<16x128xf32>
    %38 = arith.addf %36, %37 : vector<16x128xf32>
    %cst_13 = arith.constant dense<0.000000e+00> : vector<16xf32>
    %39 = vector.multi_reduction <add>, %38, %cst_13 [1] : vector<16x128xf32> to vector<16xf32>
    %40 = vector.shape_cast %39 : vector<16xf32> to vector<16x1xf32>
    %cst_14 = arith.constant 1.562500e-02 : f32
    %41 = vector.broadcast %cst_14 : f32 to vector<16x1xf32>
    %42 = arith.mulf %40, %41 : vector<16x1xf32>
    %43 = vector.broadcast %42 : vector<16x1xf32> to vector<16x128xf32>
    %44 = arith.subf %38, %43 : vector<16x128xf32>
    %c64_i32 = arith.constant 64 : i32
    %45 = vector.broadcast %c64_i32 : i32 to vector<16x128xi32>
    %46 = arith.cmpi slt, %10, %45 : vector<16x128xi32>
    %cst_15 = arith.constant 0.000000e+00 : f32
    %47 = vector.broadcast %cst_15 : f32 to vector<16x128xf32>
    %48 = arith.select %46, %44, %47 : vector<16x128xi1>, vector<16x128xf32>
    %49 = arith.mulf %48, %48 : vector<16x128xf32>
    %cst_16 = arith.constant dense<0.000000e+00> : vector<16xf32>
    %50 = vector.multi_reduction <add>, %49, %cst_16 [1] : vector<16x128xf32> to vector<16xf32>
    %51 = vector.shape_cast %50 : vector<16xf32> to vector<16x1xf32>
    %cst_17 = arith.constant 0.0158730168 : f32
    %52 = vector.broadcast %cst_17 : f32 to vector<16x1xf32>
    %53 = arith.mulf %51, %52 : vector<16x1xf32>
    %54 = math.sqrt %53 : vector<16x1xf32>
    %cst_18 = arith.constant 9.99999997E-7 : f32
    %55 = vector.broadcast %cst_18 : f32 to vector<16x1xf32>
    %56 = arith.addf %54, %55 : vector<16x1xf32>
    %57 = tpu.reciprocal %56 {approx = true} : vector<16x1xf32> -> vector<16x1xf32>
    %58 = vector.broadcast %33 : vector<1x128xf32> to vector<16x128xf32>
    %59 = arith.mulf %58, %48 : vector<16x128xf32>
    %60 = vector.broadcast %57 : vector<16x1xf32> to vector<16x128xf32>
    %61 = arith.mulf %59, %60 : vector<16x128xf32>
    %62 = vector.broadcast %34 : vector<1x128xf32> to vector<16x128xf32>
    %63 = arith.addf %61, %62 : vector<16x128xf32>
    %cst_19 = arith.constant 0.000000e+00 : f32
    %64 = vector.broadcast %cst_19 : f32 to vector<16x128xf32>
    %65 = arith.maximumf %63, %64 : vector<16x128xf32>
    %c0_20 = arith.constant 0 : index
    %c0_21 = arith.constant 0 : index
    %66 = vector.load %arg5[%c0_20, %c0_21] : memref<128x128xbf16, #tpu.memory_space<vmem>>, vector<128x128xbf16>
    %c0_22 = arith.constant 0 : index
    %c0_23 = arith.constant 0 : index
    %67 = vector.load %arg6[%c0_22, %c0_23] : memref<8x128xf32, #tpu.memory_space<vmem>>, vector<8x128xf32>
    %68 = vector.extract_strided_slice %67 {offsets = [0, 0], sizes = [1, 128], strides = [1, 1]} : vector<8x128xf32> to vector<1x128xf32>
    %69 = arith.truncf %65 : vector<16x128xf32> to vector<16x128xbf16>
    %cst_24 = arith.constant dense<0.000000e+00> : vector<16x128xf32>
    %70 = tpu.matmul %69, %66, %cst_24 {dimension_numbers = #tpu.dot_dimension_numbers<[1], [0], [0], [1], [0, 0, 1, 1], [], []>} : vector<16x128xbf16>, vector<128x128xbf16>, vector<16x128xf32> -> vector<16x128xf32>
    %71 = vector.broadcast %68 : vector<1x128xf32> to vector<16x128xf32>
    %72 = arith.addf %70, %71 : vector<16x128xf32>
    %73 = math.tanh %72 : vector<16x128xf32>
    %c0_25 = arith.constant 0 : index
    %c0_26 = arith.constant 0 : index
    %74 = vector.load %arg7[%c0_25, %c0_26] : memref<128x128xbf16, #tpu.memory_space<vmem>>, vector<128x128xbf16>
    %c0_27 = arith.constant 0 : index
    %c0_28 = arith.constant 0 : index
    %75 = vector.load %arg8[%c0_27, %c0_28] : memref<8x128xf32, #tpu.memory_space<vmem>>, vector<8x128xf32>
    %76 = vector.extract_strided_slice %75 {offsets = [0, 0], sizes = [1, 128], strides = [1, 1]} : vector<8x128xf32> to vector<1x128xf32>
    %77 = vector.extract_strided_slice %75 {offsets = [1, 0], sizes = [1, 128], strides = [1, 1]} : vector<8x128xf32> to vector<1x128xf32>
    %78 = vector.extract_strided_slice %75 {offsets = [2, 0], sizes = [1, 128], strides = [1, 1]} : vector<8x128xf32> to vector<1x128xf32>
    %79 = arith.truncf %73 : vector<16x128xf32> to vector<16x128xbf16>
    %cst_29 = arith.constant dense<0.000000e+00> : vector<16x128xf32>
    %80 = tpu.matmul %79, %74, %cst_29 {dimension_numbers = #tpu.dot_dimension_numbers<[1], [0], [0], [1], [0, 0, 1, 1], [], []>} : vector<16x128xbf16>, vector<128x128xbf16>, vector<16x128xf32> -> vector<16x128xf32>
    %81 = vector.broadcast %76 : vector<1x128xf32> to vector<16x128xf32>
    %82 = arith.addf %80, %81 : vector<16x128xf32>
    %cst_30 = arith.constant dense<0.000000e+00> : vector<16xf32>
    %83 = vector.multi_reduction <add>, %82, %cst_30 [1] : vector<16x128xf32> to vector<16xf32>
    %84 = vector.shape_cast %83 : vector<16xf32> to vector<16x1xf32>
    %cst_31 = arith.constant 3.125000e-02 : f32
    %85 = vector.broadcast %cst_31 : f32 to vector<16x1xf32>
    %86 = arith.mulf %84, %85 : vector<16x1xf32>
    %87 = vector.broadcast %86 : vector<16x1xf32> to vector<16x128xf32>
    %88 = arith.subf %82, %87 : vector<16x128xf32>
    %cst_32 = arith.constant 0.000000e+00 : f32
    %89 = vector.broadcast %cst_32 : f32 to vector<16x128xf32>
    %90 = arith.select %12, %88, %89 : vector<16x128xi1>, vector<16x128xf32>
    %91 = arith.mulf %90, %90 : vector<16x128xf32>
    %cst_33 = arith.constant dense<0.000000e+00> : vector<16xf32>
    %92 = vector.multi_reduction <add>, %91, %cst_33 [1] : vector<16x128xf32> to vector<16xf32>
    %93 = vector.shape_cast %92 : vector<16xf32> to vector<16x1xf32>
    %cst_34 = arith.constant 0.0322580636 : f32
    %94 = vector.broadcast %cst_34 : f32 to vector<16x1xf32>
    %95 = arith.mulf %93, %94 : vector<16x1xf32>
    %96 = math.sqrt %95 : vector<16x1xf32>
    %cst_35 = arith.constant 9.99999997E-7 : f32
    %97 = vector.broadcast %cst_35 : f32 to vector<16x1xf32>
    %98 = arith.addf %96, %97 : vector<16x1xf32>
    %99 = tpu.reciprocal %98 {approx = true} : vector<16x1xf32> -> vector<16x1xf32>
    %100 = vector.broadcast %77 : vector<1x128xf32> to vector<16x128xf32>
    %101 = arith.mulf %100, %90 : vector<16x128xf32>
    %102 = vector.broadcast %99 : vector<16x1xf32> to vector<16x128xf32>
    %103 = arith.mulf %101, %102 : vector<16x128xf32>
    %104 = vector.broadcast %78 : vector<1x128xf32> to vector<16x128xf32>
    %105 = arith.addf %103, %104 : vector<16x128xf32>
    %c0_36 = arith.constant 0 : index
    %c0_37 = arith.constant 0 : index
    %106 = vector.load %arg9[%c0_36, %c0_37] : memref<16x128xf32, #tpu.memory_space<vmem>>, vector<16x128xf32>
    tpu.vector_store %arg9[%c0_36, %c0_37], %105 {strides = array<i32>} : memref<16x128xf32, #tpu.memory_space<vmem>>, vector<16x128xf32>,
    return
  }
  func.func @transform_0(%arg0: i32) -> (i32, i32) {
    %c0_i32 = arith.constant 0 : i32
    %c0_i32_0 = arith.constant 0 : i32
    return %arg0, %c0_i32 : i32, i32
  }
  func.func @transform_1(%arg0: i32) -> (i32, i32) {
    %c0_i32 = arith.constant 0 : i32
    %c0_i32_0 = arith.constant 0 : i32
    %c0_i32_1 = arith.constant 0 : i32
    return %c0_i32, %c0_i32_0 : i32, i32
  }
  func.func @transform_2(%arg0: i32) -> (i32, i32) {
    %c0_i32 = arith.constant 0 : i32
    %c0_i32_0 = arith.constant 0 : i32
    %c0_i32_1 = arith.constant 0 : i32
    return %c0_i32, %c0_i32_0 : i32, i32
  }
  func.func @transform_3(%arg0: i32) -> (i32, i32) {
    %c0_i32 = arith.constant 0 : i32
    %c0_i32_0 = arith.constant 0 : i32
    %c0_i32_1 = arith.constant 0 : i32
    return %c0_i32, %c0_i32_0 : i32, i32
  }
  func.func @transform_4(%arg0: i32) -> (i32, i32) {
    %c0_i32 = arith.constant 0 : i32
    %c0_i32_0 = arith.constant 0 : i32
    %c0_i32_1 = arith.constant 0 : i32
    return %c0_i32, %c0_i32_0 : i32, i32
  }
  func.func @transform_5(%arg0: i32) -> (i32, i32) {
    %c0_i32 = arith.constant 0 : i32
    %c0_i32_0 = arith.constant 0 : i32
    %c0_i32_1 = arith.constant 0 : i32
    return %c0_i32, %c0_i32_0 : i32, i32
  }
  func.func @transform_6(%arg0: i32) -> (i32, i32) {
    %c0_i32 = arith.constant 0 : i32
    %c0_i32_0 = arith.constant 0 : i32
    %c0_i32_1 = arith.constant 0 : i32
    return %c0_i32, %c0_i32_0 : i32, i32
  }
  func.func @transform_7(%arg0: i32) -> (i32, i32) {
    %c0_i32 = arith.constant 0 : i32
    %c0_i32_0 = arith.constant 0 : i32
    %c0_i32_1 = arith.constant 0 : i32
    return %c0_i32, %c0_i32_0 : i32, i32
  }
  func.func @transform_8(%arg0: i32) -> (i32, i32) {
    %c0_i32 = arith.constant 0 : i32
    %c0_i32_0 = arith.constant 0 : i32
    return %arg0, %c0_i32 : i32, i32
  }
}

</mosaic_0001>

<bundles_post_ra>
// kernel: tpu_custom_call.1
= control target key start
LH: loop header
LB: loop body
LE: loop exit
PB: predicated region body
PF: predicated region fallthrough
CT: control target
= control target key end

     0   :  { %13 = vsyncpa [#allocation3], 0  ;;  %s1167_s0 = inlined_call_operand.hbm [shape: f32[16,128], index: 0, kind: input, shape index: {}]   ;;  %s1168_s1 = inlined_call_operand.hbm [shape: f32[8,128], index: 1, kind: input, shape index: {}]   ;;  %s1169_s2 = inlined_call_operand.hbm [shape: bf16[128,128], index: 2, kind: input, shape index: {}]   ;;  %s1170_s3 = inlined_call_operand.vmem [shape: f32[8,128], index: 3, kind: input, shape index: {}]   ;;  %s1171_s4 = inlined_call_operand.hbm [shape: bf16[128,128], index: 4, kind: input, shape index: {}]   ;;  %s1172_s5 = inlined_call_operand.vmem [shape: f32[8,128], index: 5, kind: input, shape index: {}]   ;;  %s1173_s6 = inlined_call_operand.hbm [shape: bf16[128,128], index: 6, kind: input, shape index: {}]   ;;  %s1174_s7 = inlined_call_operand.vmem [shape: f32[8,128], index: 7, kind: input, shape index: {}]   ;;  %s1175_s8 = inlined_call_operand.hbm [shape: f32[16,128], index: 8, kind: output, shape index: {}]  }
   0x1   :  { %14 = vsyncpa [#allocation6], 0 }
   0x2   :  { %15 = vsyncpa [#allocation9], 0 }
   0x3   :  { %16 = vsyncpa [#allocation4], 0  ;;  %s927_s27 = smov [#allocation5]   ;;  %s787_s9 = scalar_lea.hbm %s1168_s1, 128 }
   0x4   :  { %s35_s28 = sshll.u32 %s927_s27, 4  ;;  %p788_p0 = scmp.ne.s32.totalorder %s1168_s1, %s787_s9  ;;  %s36_s28 = int_to_ptr.vmem [resolvable:$true] %s35_s28 }
   0x5   :  { %p791_p1 = scmp.lt.u32.totalorder %s787_s9, %s1168_s1 }
   0x7   :  { %p793_p2 = pnand %p791_p1, %p788_p0 }
   0x9   :  { %796 = shalt.err (!%p793_p2)
}
   0xa   :  { %s797_s14 = scalar_lea.vmem %s36_s28, 128  ;;  %p802_p4 = scmp.lt.s32.totalorder %s36_s28, %s36_s28 }
   0xb   :  { %p798_p3 = scmp.ne.s32.totalorder %s36_s28, %s797_s14  ;;  %p803_p5 = scmp.lt.s32.totalorder %s797_s14, %s797_s14 }
   0xd   :  { %p804_p6 = por %p803_p5, %p802_p4 }
   0xf   :  { %p805_p7 = pnand %p804_p6, %p798_p3 }
  0x11   :  { %808 = shalt.err (!%p805_p7)
}
  0x12   :  { %38 = dma.hbm_to_vmem [thread:$0]  %s1168_s1, 128, %s36_s28, [#allocation6]  }
  0x13   :  { %s928_s17 = smov [#allocation8]   ;;  %s929_s19 = smov [#allocation2]  }
  0x14   :  { %s58_s18 = sshll.u32 %s928_s17, 4  ;;  %s22_s20 = sshll.u32 %s929_s19, 4  ;;  %s59_s18 = int_to_ptr.vmem [resolvable:$true] %s58_s18  ;;  %s23_s20 = int_to_ptr.vmem [resolvable:$true] %s22_s20 }
  0x15   :  { %s809_s23 = scalar_lea.hbm %s1171_s4, 1024 }
  0x16   :  { %p810_p8 = scmp.ne.s32.totalorder %s1171_s4, %s809_s23  ;;  %p813_p9 = scmp.lt.u32.totalorder %s809_s23, %s1171_s4 }
  0x18   :  { %p815_p10 = pnand %p813_p9, %p810_p8 }
  0x1a   :  { %818 = shalt.err (!%p815_p10)
}
  0x1b   :  { %s819_s1 = scalar_lea.vmem %s59_s18, 1024  ;;  %p824_p12 = scmp.lt.s32.totalorder %s59_s18, %s59_s18 }
  0x1c   :  { %p820_p11 = scmp.ne.s32.totalorder %s59_s18, %s819_s1  ;;  %p825_p13 = scmp.lt.s32.totalorder %s819_s1, %s819_s1 }
  0x1e   :  { %p826_p0 = por %p825_p13, %p824_p12 }
  0x20   :  { %p827_p1 = pnand %p826_p0, %p820_p11 }
  0x22   :  { %830 = shalt.err (!%p827_p1)
}
  0x23   :  { %s930_s28 = smov 64   ;;  %s931_s29 = smov 4  }
  0x24   :  { %64 = dma.hbm_to_vmem [thread:$0]  %s1171_s4, 1024, %s59_s18, [#allocation9], %s930_s28, %s930_s28, %s931_s29  }
  0x25   :  { %s831_s12 = scalar_lea.hbm %s1167_s0, 256 }
  0x26   :  { %p832_p2 = scmp.ne.s32.totalorder %s1167_s0, %s831_s12  ;;  %p835_p3 = scmp.lt.u32.totalorder %s831_s12, %s1167_s0 }
  0x28   :  { %p837_p4 = pnand %p835_p3, %p832_p2 }
  0x2a   :  { %840 = shalt.err (!%p837_p4)
}
  0x2b   :  { %s841_s17 = scalar_lea.vmem %s23_s20, 256  ;;  %p846_p6 = scmp.lt.s32.totalorder %s23_s20, %s23_s20 }
  0x2c   :  { %p842_p5 = scmp.ne.s32.totalorder %s23_s20, %s841_s17  ;;  %p847_p7 = scmp.lt.s32.totalorder %s841_s17, %s841_s17 }
  0x2e   :  { %p848_p8 = por %p847_p7, %p846_p6 }
  0x30   :  { %p849_p9 = pnand %p848_p8, %p842_p5 }
  0x32   :  { %852 = shalt.err (!%p849_p9)
}
  0x33   :  { %s932_s4 = smov 128   ;;  %s933_s18 = smov 8  }
  0x34   :  { %28 = dma.hbm_to_vmem [thread:$0]  %s1167_s0, 256, %s23_s20, [#allocation3], %s932_s4, %s932_s4, %s933_s18  }
  0x35   :  { %s934_s22 = smov [#allocation7]   ;;  %s935_s24 = smov [#allocation10]  }
  0x36   :  { %s44_s23 = sshll.u32 %s934_s22, 4  ;;  %s72_s25 = sshll.u32 %s935_s24, 4  ;;  %s45_s23 = int_to_ptr.vmem [resolvable:$true] %s44_s23  ;;  %s73_s25 = int_to_ptr.vmem [resolvable:$true] %s72_s25 }
  0x37   :  { %s853_s1 = scalar_lea.hbm %s1169_s2, 1024 }
  0x38   :  { %p854_p10 = scmp.ne.s32.totalorder %s1169_s2, %s853_s1  ;;  %p857_p11 = scmp.lt.u32.totalorder %s853_s1, %s1169_s2 }
  0x3a   :  { %p859_p12 = pnand %p857_p11, %p854_p10 }
  0x3c   :  { %862 = shalt.err (!%p859_p12)
}
  0x3d   :  { %s863_s0 = scalar_lea.vmem %s45_s23, 1024  ;;  %p868_p0 = scmp.lt.s32.totalorder %s45_s23, %s45_s23 }
  0x3e   :  { %p864_p13 = scmp.ne.s32.totalorder %s45_s23, %s863_s0  ;;  %p869_p1 = scmp.lt.s32.totalorder %s863_s0, %s863_s0 }
  0x40   :  { %p870_p2 = por %p869_p1, %p868_p0 }
  0x42   :  { %p871_p3 = pnand %p870_p2, %p864_p13 }
  0x44   :  { %874 = shalt.err (!%p871_p3)
}
  0x45   :  { %50 = dma.hbm_to_vmem [thread:$0]  %s1169_s2, 1024, %s45_s23, [#allocation6], %s930_s28, %s930_s28, %s931_s29  }
  0x46   :  { %s875_s15 = scalar_lea.hbm %s1173_s6, 1024 }
  0x47   :  { %p876_p4 = scmp.ne.s32.totalorder %s1173_s6, %s875_s15  ;;  %p879_p5 = scmp.lt.u32.totalorder %s875_s15, %s1173_s6 }
  0x49   :  { %p881_p6 = pnand %p879_p5, %p876_p4 }
  0x4b   :  { %884 = shalt.err (!%p881_p6)
}
  0x4c   :  { %s885_s22 = scalar_lea.vmem %s73_s25, 1024  ;;  %p890_p8 = scmp.lt.s32.totalorder %s73_s25, %s73_s25 }
  0x4d   :  { %p886_p7 = scmp.ne.s32.totalorder %s73_s25, %s885_s22  ;;  %p891_p9 = scmp.lt.s32.totalorder %s885_s22, %s885_s22 }
  0x4f   :  { %p892_p10 = por %p891_p9, %p890_p8 }
  0x51   :  { %p893_p11 = pnand %p892_p10, %p886_p7 }
  0x53   :  { %896 = shalt.err (!%p893_p11)
}
  0x54   :  { %78 = dma.hbm_to_vmem [thread:$0]  %s1173_s6, 1024, %s73_s25, [#allocation9], %s930_s28, %s930_s28, %s931_s29  }
  0x55   :  { %919 = dma.done.wait [#allocation3], 256  }
  0x56   :  { %920 = vsyncadd [#allocation3], 4294967040 }
  0x57   :  { %921 = dma.done.wait [#allocation6], 1152  }
  0x58   :  { %922 = vsyncadd [#allocation6], 4294966144 }
  0x59   :  { %923 = dma.done.wait [#allocation9], 2048  }
  0x5a   :  { %924 = vsyncadd [#allocation9], 4294965248  ;;  %v97_v0 = vld [vmem:[#allocation2] sm:$0xff]  ;;  %v98_v1 = vld [vmem:[#allocation2 + $0x8] sm:$0xff]  ;;  %v108_v2 = vlaneseq  ;;  %v936_v15 = vmov 0.0   ;;  %vm937_vm1 = vmmov 0  }
  0x5b   :  { %100 = vadd.xlane.f32.xlu0 %v97_v0  ;;  %v735_v14 = vld [vmem:[#allocation7] sm:$0xff]   ;;  %663 = vmatprep.subr.bf16.mxu0 %v936_v15  ;;  %v736_v16 = vld [vmem:[#allocation7 + $0x8] sm:$0xff]   ;;  %v737_v17 = vld [vmem:[#allocation7 + $0x10] sm:$0xff]  }
  0x5c   :  { %v1056_v3 = vand.u32 127, %v108_v2  ;;  %683 = vmatprep.subr.bf16.mxu1 %v936_v15  ;;  %664 = vmatpush3.bf16.msra.mxu0 %v735_v14  ;;  %v738_v18 = vld [vmem:[#allocation7 + $0x18] sm:$0xff]   ;;  %v739_v19 = vld [vmem:[#allocation7 + $0x20] sm:$0xff]   ;;  %v740_v20 = vld [vmem:[#allocation7 + $0x28] sm:$0xff]   ;;  %v1085_v35 = vshrl.u32 %v108_v2, 7 }
  0x5d   :  { %665 = vmatprep.subr.bf16.mxu0 %v936_v15  ;;  %679 = vmatprep.mubr.msk.bf16.mxu0 %vm937_vm1, %v936_v15  ;;  %v741_v21 = vld [vmem:[#allocation7 + $0x30] sm:$0xff]   ;;  %v742_v22 = vld [vmem:[#allocation7 + $0x38] sm:$0xff]   ;;  %v1102_v54 = vld [vmem:[%s1170_s3] sm:$0xff] }
  0x5e   :  { %vm110_vm0 = vcmp.lt.s32.totalorder %v1056_v3, 32  ;;  %699 = vmatprep.mubr.msk.bf16.mxu1 %vm937_vm1, %v936_v15  ;;  %v1088_v40 = vsub.s32 0, %v1085_v35  ;;  %v99_v41 = vld [vmem:[#allocation5] sm:$0xff]  ;;  %v1092_v43 = vsub.s32 1, %v1085_v35  ;;  %vm272_vm6 = vcmp.lt.s32.totalorder %v1056_v3, 64  ;;  %v748_v14 = vld [vmem:[#allocation8 + $0x28] sm:$0xff]  }
  0x5f   :  { %102 = vadd.xlane.f32.xlu0 %v98_v1 }
  0x60   :  { %666 = vmatpush3.bf16.msra.mxu0 %v736_v16  ;;  %v142_v42 = vrot.slane %v99_v41, %v1088_v40  ;;  %v150_v46 = vrot.slane %v99_v41, %v1092_v43  ;;  %v174_v55 = vrot.slane %v1102_v54, %v1088_v40  ;;  %v749_v16 = vld [vmem:[#allocation8 + $0x30] sm:$0xff]   ;;  %v311_v41 = vsub.s32 2, %v1085_v35 }
  0x61   :  { %667 = vmatprep.subr.bf16.mxu0 %v936_v15 }
  0x64   :  { %668 = vmatpush3.bf16.msra.mxu0 %v737_v17  ;;  %v750_v17 = vld [vmem:[#allocation8 + $0x38] sm:$0xff]  }
  0x65   :  { %669 = vmatprep.subr.bf16.mxu0 %v936_v15 }
  0x68   :  { %670 = vmatpush3.bf16.msra.mxu0 %v738_v18  ;;  %v751_v18 = vld [vmem:[#allocation10] sm:$0xff]  }
  0x69   :  { %671 = vmatprep.subr.bf16.mxu0 %v936_v15 }
  0x6c   :  { %672 = vmatpush3.bf16.msra.mxu0 %v739_v19  ;;  %v752_v19 = vld [vmem:[#allocation10 + $0x8] sm:$0xff]  }
  0x6d   :  { %673 = vmatprep.subr.bf16.mxu0 %v936_v15 }
  0x70   :  { %674 = vmatpush3.bf16.msra.mxu0 %v740_v20  ;;  %v753_v20 = vld [vmem:[#allocation10 + $0x10] sm:$0xff]  }
  0x71   :  { %675 = vmatprep.subr.bf16.mxu0 %v936_v15 }
  0x74   :  { %676 = vmatpush3.bf16.msra.mxu0 %v741_v21  ;;  %v754_v21 = vld [vmem:[#allocation10 + $0x18] sm:$0xff]  }
  0x75   :  { %677 = vmatprep.subr.bf16.mxu0 %v936_v15 }
  0x78   :  { %678 = vmatpush3.bf16.msra.mxu0 %v742_v22 }
  0x79   :  { %703 = vmatprep.subr.bf16.mxu0 %v936_v15 }
  0xe8   :  { %v101_v4 = vpop.xlane.xlu0 %100 }
  0xe9   :  { %v104_v5 = vmul.f32 0.03125, %v101_v4 }
  0xeb   :  { %v106_v6 = vsub.f32 %v97_v0, %v104_v5 }
  0xec   :  { %v103_v7 = vpop.xlane.xlu0 %102 }
  0xed   :  { %v105_v8 = vmul.f32 0.03125, %v103_v7  ;;  %v1061_v9 = vsel %vm110_vm0, %v106_v6, 0.0 }
  0xee   :  { %v113_v10 = vmul.f32 %v1061_v9, %v1061_v9  ;;  %v143_v45 = vmul.f32 %v142_v42, %v1061_v9  ;;  %v743_v9 = vld [vmem:[#allocation8] sm:$0xff]  }
  0xef   :  { %v107_v11 = vsub.f32 %v98_v1, %v105_v8  ;;  %684 = vmatpush3.bf16.msra.mxu1 %v743_v9 }
  0xf0   :  { %115 = vadd.xlane.f32.xlu1 %v113_v10  ;;  %685 = vmatprep.subr.bf16.mxu1 %v936_v15  ;;  %v744_v10 = vld [vmem:[#allocation8 + $0x8] sm:$0xff]  }
  0xf1   :  { %v1067_v12 = vsel %vm110_vm0, %v107_v11, 0.0  ;;  %v745_v11 = vld [vmem:[#allocation8 + $0x10] sm:$0xff]  }
  0xf2   :  { %v114_v13 = vmul.f32 %v1067_v12, %v1067_v12  ;;  %v144_v47 = vmul.f32 %v142_v42, %v1067_v12  ;;  %v746_v12 = vld [vmem:[#allocation8 + $0x18] sm:$0xff]  }
  0xf3   :  { %686 = vmatpush3.bf16.msra.mxu1 %v744_v10 }
  0xf4   :  { %117 = vadd.xlane.f32.xlu1 %v114_v13  ;;  %687 = vmatprep.subr.bf16.mxu1 %v936_v15  ;;  %v747_v13 = vld [vmem:[#allocation8 + $0x20] sm:$0xff]  }
  0xf7   :  { %688 = vmatpush3.bf16.msra.mxu1 %v745_v11 }
  0xf8   :  { %689 = vmatprep.subr.bf16.mxu1 %v936_v15 }
  0xfb   :  { %690 = vmatpush3.bf16.msra.mxu1 %v746_v12 }
  0xfc   :  { %691 = vmatprep.subr.bf16.mxu1 %v936_v15 }
  0xff   :  { %692 = vmatpush3.bf16.msra.mxu1 %v747_v13 }
 0x100   :  { %693 = vmatprep.subr.bf16.mxu1 %v936_v15 }
 0x103   :  { %694 = vmatpush3.bf16.msra.mxu1 %v748_v14 }
 0x104   :  { %695 = vmatprep.subr.bf16.mxu1 %v936_v15 }
 0x107   :  { %696 = vmatpush3.bf16.msra.mxu1 %v749_v16 }
 0x108   :  { %697 = vmatprep.subr.bf16.mxu1 %v936_v15 }
 0x10b   :  { %698 = vmatpush3.bf16.msra.mxu1 %v750_v17 }
 0x17d   :  { %v116_v23 = vpop.xlane.xlu1 %115 }
 0x17e   :  { %v119_v24 = vmul.f32 0.032258064, %v116_v23 }
 0x180   :  { %759 = vrsqrt.f32 %v119_v24  ;;  %vm123_vm2 = vcmp.eq.f32.partialorder %v119_v24, inf  ;;  %v126_v29 = vand.u32 2147483648, %v119_v24  ;;  %vm125_vm3 = vcmp.eq.f32.partialorder %v119_v24, 0.0 }
 0x181   :  { %v118_v25 = vpop.xlane.xlu1 %117 }
 0x182   :  { %v120_v26 = vmul.f32 0.032258064, %v118_v25 }
 0x184   :  { %761 = vrsqrt.f32 %v120_v26  ;;  %vm130_vm4 = vcmp.eq.f32.partialorder %v120_v26, inf  ;;  %v133_v36 = vand.u32 2147483648, %v120_v26  ;;  %vm132_vm5 = vcmp.eq.f32.partialorder %v120_v26, 0.0 }
 0x18a   :  { %v760_v27 = vpop.eup %759 }
 0x18b   :  { %v122_v28 = vmul.f32 %v760_v27, %v119_v24 }
 0x18d   :  { %v124_v30 = vsel %vm123_vm2, %v119_v24, %v122_v28 }
 0x18e   :  { %v762_v31 = vpop.eup %761  ;;  %v127_v32 = vsel %vm125_vm3, %v126_v29, %v124_v30 }
 0x18f   :  { %v129_v33 = vmul.f32 %v762_v31, %v120_v26  ;;  %v135_v34 = vadd.f32 1e-06, %v127_v32 }
 0x191   :  { %v131_v37 = vsel %vm130_vm4, %v120_v26, %v129_v33  ;;  %763 = vrcp.f32 %v135_v34 }
 0x192   :  { %v134_v38 = vsel %vm132_vm5, %v133_v36, %v131_v37 }
 0x193   :  { %v136_v39 = vadd.f32 1e-06, %v134_v38 }
 0x195   :  { %765 = vrcp.f32 %v136_v39  ;;  %v304_v39 = vrot.slane %v1102_v54, %v1092_v43 }
 0x19b   :  { %v764_v44 = vpop.eup %763 }
 0x19c   :  { %v145_v48 = vmul.f32 %v764_v44, %v143_v45  ;;  %v312_v45 = vrot.slane %v1102_v54, %v311_v41  ;;  %v758_v54 = vld [vmem:[#allocation10 + $0x38] sm:$0xff]  }
 0x19e   :  { %v151_v51 = vadd.f32 %v150_v46, %v145_v48 }
 0x19f   :  { %v766_v49 = vpop.eup %765 }
 0x1a0   :  { %v146_v50 = vmul.f32 %v766_v49, %v144_v47 }
 0x1a2   :  { %v152_v52 = vadd.f32 %v150_v46, %v146_v50 }
 0x1a4   :  { %v170_v53 = vpack.c.bf16 %v152_v52, %v151_v51 }
 0x1a6   :  { %680 = vmatmul.mubr.bf16.vlgmr.msra.gmra.mrb[0].mxu0 %v170_v53 }
 0x1a7   :  { %719 = vmatprep.mubr.msk.bf16.mxu0 %vm937_vm1, %v936_v15  ;;  %704 = vmatpush3.bf16.msra.mxu0 %v751_v18 }
 0x1a8   :  { %705 = vmatprep.subr.bf16.mxu0 %v936_v15 }
 0x1ab   :  { %706 = vmatpush3.bf16.msra.mxu0 %v752_v19 }
 0x1ac   :  { %707 = vmatprep.subr.bf16.mxu0 %v936_v15 }
 0x1af   :  { %708 = vmatpush3.bf16.msra.mxu0 %v753_v20 }
 0x1b0   :  { %709 = vmatprep.subr.bf16.mxu0 %v936_v15 }
 0x1b3   :  { %710 = vmatpush3.bf16.msra.mxu0 %v754_v21 }
 0x1b4   :  { %711 = vmatprep.subr.bf16.mxu0 %v936_v15 }
 0x279   :  { %v257_v56 = vpop.f32.mrb[0].mxu0 }
 0x27a   :  { %v258_v57 = vadd.f32 %v257_v56, %v174_v55  ;;  %v681_v58 = vpop.f32.mrb[1].mxu0  ;;  %v755_v56 = vld [vmem:[#allocation10 + $0x20] sm:$0xff]  }
 0x27b   :  { %v260_v59 = vpop.f32.mrb[2].mxu0  ;;  %712 = vmatpush3.bf16.msra.mxu0 %v755_v56  ;;  %v757_v58 = vld [vmem:[#allocation10 + $0x30] sm:$0xff]  }
 0x27c   :  { %v261_v60 = vadd.f32 %v260_v59, %v174_v55  ;;  %264 = vadd.xlane.f32.xlu0 %v258_v57  ;;  %v682_v61 = vpop.f32.mrb[3].mxu0  ;;  %713 = vmatprep.subr.bf16.mxu0 %v936_v15  ;;  %v333_v59 = vld [vmem:[%s1172_s5] sm:$0xff]  ;;  %s938_s5 = smov [#allocation11]  }
 0x27e   :  { %266 = vadd.xlane.f32.xlu1 %v261_v60 }
 0x309   :  { %v265_v62 = vpop.xlane.xlu0 %264 }
 0x30a   :  { %v268_v63 = vmul.f32 0.015625, %v265_v62 }
 0x30b   :  { %v267_v0 = vpop.xlane.xlu1 %266 }
 0x30c   :  { %v270_v1 = vsub.f32 %v258_v57, %v268_v63  ;;  %v269_v2 = vmul.f32 0.015625, %v267_v0  ;;  %v756_v57 = vld [vmem:[#allocation10 + $0x28] sm:$0xff]  }
 0x30d   :  { %714 = vmatpush3.bf16.msra.mxu0 %v756_v57 }
 0x30e   :  { %v271_v4 = vsub.f32 %v261_v60, %v269_v2  ;;  %v1107_v5 = vsel %vm272_vm6, %v270_v1, 0.0  ;;  %715 = vmatprep.subr.bf16.mxu0 %v936_v15  ;;  %v338_v60 = vrot.slane %v333_v59, %v1088_v40 }
 0x30f   :  { %v275_v6 = vmul.f32 %v1107_v5, %v1107_v5  ;;  %v305_v42 = vmul.f32 %v304_v39, %v1107_v5 }
 0x310   :  { %v1111_v7 = vsel %vm272_vm6, %v271_v4, 0.0 }
 0x311   :  { %277 = vadd.xlane.f32.xlu0 %v275_v6  ;;  %v276_v8 = vmul.f32 %v1111_v7, %v1111_v7  ;;  %v306_v47 = vmul.f32 %v304_v39, %v1111_v7  ;;  %716 = vmatpush3.bf16.msra.mxu0 %v757_v58 }
 0x312   :  { %717 = vmatprep.subr.bf16.mxu0 %v936_v15  ;;  %v446_v15 = vld [vmem:[%s1174_s7] sm:$0xff]  ;;  %s598_s7 = sshll.u32 %s938_s5, 4  ;;  %s599_s7 = int_to_ptr.vmem [resolvable:$true] %s598_s7 }
 0x313   :  { %279 = vadd.xlane.f32.xlu1 %v276_v8  ;;  %v451_v7 = vrot.slane %v446_v15, %v1088_v40  ;;  %s897_s26 = scalar_lea.vmem %s599_s7, 256  ;;  %p902_p13 = scmp.lt.s32.totalorder %s599_s7, %s599_s7 }
 0x314   :  { %p898_p12 = scmp.ne.s32.totalorder %s599_s7, %s897_s26  ;;  %p903_p0 = scmp.lt.s32.totalorder %s897_s26, %s897_s26 }
 0x315   :  { %718 = vmatpush3.bf16.msra.mxu0 %v758_v54 }
 0x316   :  { %p904_p1 = por %p903_p0, %p902_p13 }
 0x318   :  { %p905_p2 = pnand %p904_p1, %p898_p12 }
 0x39e   :  { %v278_v22 = vpop.xlane.xlu0 %277 }
 0x39f   :  { %v281_v23 = vmul.f32 0.015873017, %v278_v22 }
 0x3a0   :  { %v280_v24 = vpop.xlane.xlu1 %279 }
 0x3a1   :  { %767 = vrsqrt.f32 %v281_v23  ;;  %v282_v25 = vmul.f32 0.015873017, %v280_v24  ;;  %vm285_vm7 = vcmp.eq.f32.partialorder %v281_v23, inf  ;;  %v288_v28 = vand.u32 2147483648, %v281_v23 }
 0x3a2   :  { %vm287_vm8 = vcmp.eq.f32.partialorder %v281_v23, 0.0 }
 0x3a3   :  { %769 = vrsqrt.f32 %v282_v25  ;;  %vm292_vm9 = vcmp.eq.f32.partialorder %v282_v25, inf  ;;  %v295_v33 = vand.u32 2147483648, %v282_v25  ;;  %vm294_vm10 = vcmp.eq.f32.partialorder %v282_v25, 0.0 }
 0x3ab   :  { %v768_v26 = vpop.eup %767 }
 0x3ac   :  { %v284_v27 = vmul.f32 %v768_v26, %v281_v23 }
 0x3ad   :  { %v770_v29 = vpop.eup %769 }
 0x3ae   :  { %v286_v30 = vsel %vm285_vm7, %v281_v23, %v284_v27  ;;  %v291_v31 = vmul.f32 %v770_v29, %v282_v25 }
 0x3af   :  { %v289_v32 = vsel %vm287_vm8, %v288_v28, %v286_v30 }
 0x3b0   :  { %v297_v34 = vadd.f32 1e-06, %v289_v32  ;;  %v293_v36 = vsel %vm292_vm9, %v282_v25, %v291_v31 }
 0x3b1   :  { %v296_v37 = vsel %vm294_vm10, %v295_v33, %v293_v36 }
 0x3b2   :  { %771 = vrcp.f32 %v297_v34  ;;  %v298_v38 = vadd.f32 1e-06, %v296_v37 }
 0x3b4   :  { %773 = vrcp.f32 %v298_v38 }
 0x3bc   :  { %v772_v44 = vpop.eup %771 }
 0x3bd   :  { %v307_v46 = vmul.f32 %v772_v44, %v305_v42  ;;  %v580_v42 = vrot.slane %v446_v15, %v1092_v43  ;;  %v588_v44 = vrot.slane %v446_v15, %v311_v41 }
 0x3be   :  { %v774_v48 = vpop.eup %773 }
 0x3bf   :  { %v308_v49 = vmul.f32 %v774_v48, %v306_v47  ;;  %v313_v50 = vadd.f32 %v312_v45, %v307_v46 }
 0x3c1   :  { %v314_v51 = vadd.f32 %v312_v45, %v308_v49  ;;  %v315_v52 = vmax.f32 %v313_v50, 0.0 }
 0x3c3   :  { %v316_v53 = vmax.f32 %v314_v51, 0.0 }
 0x3c5   :  { %v334_v55 = vpack.c.bf16 %v316_v53, %v315_v52 }
 0x3c7   :  { %700 = vmatmul.mubr.bf16.vlgmr.msra.gmra.mrb[0].mxu1 %v334_v55 }
 0x49a   :  { %v421_v61 = vpop.f32.mrb[0].mxu1 }
 0x49b   :  { %v422_v62 = vadd.f32 %v421_v61, %v338_v60  ;;  %v701_v63 = vpop.f32.mrb[1].mxu1 }
 0x49c   :  { %v424_v0 = vpop.f32.mrb[2].mxu1 }
 0x49d   :  { %v425_v1 = vadd.f32 %v424_v0, %v338_v60  ;;  %v702_v2 = vpop.f32.mrb[3].mxu1  ;;  %775 = vtanh.f32 %v422_v62 }
 0x49f   :  { %777 = vtanh.f32 %v425_v1 }
 0x4a7   :  { %v776_v4 = vpop.eup %775 }
 0x4a9   :  { %v778_v5 = vpop.eup %777 }
 0x4aa   :  { %v447_v6 = vpack.c.bf16 %v778_v5, %v776_v4 }
 0x4ac   :  { %720 = vmatmul.mubr.bf16.vlgmr.msra.gmra.mrb[4].mxu0 %v447_v6 }
 0x57f   :  { %v534_v8 = vpop.f32.mrb[4].mxu0 }
 0x580   :  { %v535_v9 = vadd.f32 %v534_v8, %v451_v7  ;;  %v721_v10 = vpop.f32.mrb[5].mxu0 }
 0x581   :  { %v537_v11 = vpop.f32.mrb[6].mxu0 }
 0x582   :  { %v538_v12 = vadd.f32 %v537_v11, %v451_v7  ;;  %541 = vadd.xlane.f32.xlu0 %v535_v9  ;;  %v722_v13 = vpop.f32.mrb[7].mxu0 }
 0x584   :  { %543 = vadd.xlane.f32.xlu1 %v538_v12 }
 0x60f   :  { %v542_v14 = vpop.xlane.xlu0 %541 }
 0x610   :  { %v545_v16 = vmul.f32 0.03125, %v542_v14 }
 0x611   :  { %v544_v17 = vpop.xlane.xlu1 %543 }
 0x612   :  { %v547_v18 = vsub.f32 %v535_v9, %v545_v16  ;;  %v546_v19 = vmul.f32 0.03125, %v544_v17 }
 0x614   :  { %v548_v20 = vsub.f32 %v538_v12, %v546_v19  ;;  %v549_v21 = vsel %vm110_vm0, %v547_v18, 0.0 }
 0x615   :  { %v551_v22 = vmul.f32 %v549_v21, %v549_v21  ;;  %v581_v45 = vmul.f32 %v580_v42, %v549_v21 }
 0x616   :  { %v550_v40 = vsel %vm110_vm0, %v548_v20, 0.0 }
 0x617   :  { %553 = vadd.xlane.f32.xlu0 %v551_v22  ;;  %v552_v23 = vmul.f32 %v550_v40, %v550_v40  ;;  %v582_v48 = vmul.f32 %v580_v42, %v550_v40 }
 0x619   :  { %555 = vadd.xlane.f32.xlu1 %v552_v23 }
 0x6a4   :  { %v554_v24 = vpop.xlane.xlu0 %553 }
 0x6a5   :  { %v557_v25 = vmul.f32 0.032258064, %v554_v24 }
 0x6a6   :  { %v556_v26 = vpop.xlane.xlu1 %555 }
 0x6a7   :  { %779 = vrsqrt.f32 %v557_v25  ;;  %v558_v27 = vmul.f32 0.032258064, %v556_v26  ;;  %vm561_vm11 = vcmp.eq.f32.partialorder %v557_v25, inf  ;;  %v564_v30 = vand.u32 2147483648, %v557_v25 }
 0x6a8   :  { %vm563_vm12 = vcmp.eq.f32.partialorder %v557_v25, 0.0 }
 0x6a9   :  { %781 = vrsqrt.f32 %v558_v27  ;;  %vm568_vm13 = vcmp.eq.f32.partialorder %v558_v27, inf  ;;  %v571_v3 = vand.u32 2147483648, %v558_v27  ;;  %vm570_vm14 = vcmp.eq.f32.partialorder %v558_v27, 0.0 }
 0x6b1   :  { %v780_v28 = vpop.eup %779 }
 0x6b2   :  { %v560_v29 = vmul.f32 %v780_v28, %v557_v25 }
 0x6b3   :  { %v782_v31 = vpop.eup %781 }
 0x6b4   :  { %v562_v32 = vsel %vm561_vm11, %v557_v25, %v560_v29  ;;  %v567_v33 = vmul.f32 %v782_v31, %v558_v27 }
 0x6b5   :  { %v565_v34 = vsel %vm563_vm12, %v564_v30, %v562_v32 }
 0x6b6   :  { %v573_v36 = vadd.f32 1e-06, %v565_v34  ;;  %v569_v37 = vsel %vm568_vm13, %v558_v27, %v567_v33 }
 0x6b7   :  { %v572_v38 = vsel %vm570_vm14, %v571_v3, %v569_v37 }
 0x6b8   :  { %783 = vrcp.f32 %v573_v36  ;;  %v574_v39 = vadd.f32 1e-06, %v572_v38 }
 0x6ba   :  { %785 = vrcp.f32 %v574_v39 }
 0x6c2   :  { %v784_v46 = vpop.eup %783 }
 0x6c3   :  { %v583_v47 = vmul.f32 %v784_v46, %v581_v45 }
 0x6c4   :  { %v786_v49 = vpop.eup %785 }
 0x6c5   :  { %v589_v50 = vadd.f32 %v588_v44, %v583_v47  ;;  %v584_v51 = vmul.f32 %v786_v49, %v582_v48 }
 0x6c7   :  { %591 = vst [vmem:[#allocation11] sm:$0xff] %v589_v50  ;;  %v590_v52 = vadd.f32 %v588_v44, %v584_v51 }
 0x6c9   :  { %592 = vst [vmem:[#allocation11 + $0x8] sm:$0xff] %v590_v52 }
 0x6ca   :  { %908 = shalt.err (!%p905_p2)
}
 0x6cb   :  { %s909_s30 = scalar_lea.hbm %s1175_s8, 256 }
 0x6cc   :  { %p910_p3 = scmp.ne.s32.totalorder %s1175_s8, %s909_s30  ;;  %p913_p4 = scmp.lt.u32.totalorder %s909_s30, %s1175_s8 }
 0x6ce   :  { %p915_p5 = pnand %p913_p4, %p910_p3 }
 0x6d0   :  { %918 = shalt.err (!%p915_p5)
}
 0x6d1   :  { %604 = dma.vmem_to_hbm [thread:$0]  %s599_s7, 256, %s1175_s8, [#allocation4], %s932_s4, %s932_s4, %s933_s18  }
 0x6d2   :  { %925 = dma.done.wait [#allocation4], 256  }
 0x6d3   :  { %926 = vsyncadd [#allocation4], 4294967040 }
 0x6d4   :  { %608 = vsyncpa [#allocation3], 1 }
 0x6d5   :  { %609 = vsyncpa [#allocation6], 1 }
 0x6d6   :  { %610 = vsyncpa [#allocation9], 1 }
 0x6d7   :  { %611 = vsyncpa [#allocation4], 1 }

</bundles_post_ra>
